<compile_context>
chip_gen: v7x
topology: tpu7x:2x2x1
jax: 0.10.0
libtpu: 0.0.40
codegen_flags: <defaults>
</compile_context>

<pallas_src>
import functools
import math

import jax
import jax.numpy as jnp
from jax.experimental import pallas as pl
from jax.experimental.pallas import tpu as pltpu


# --------------------------------------------------------------------------
# Kernel
# --------------------------------------------------------------------------
def _clustering_attention_kernel(x_ref, wf_ref, bf_ref, cs_ref, c_ref,
                                 fused_ref, cw_ref):
    # Fused projection (out_proj o v_proj): attn = x @ W_fused^T + b_fused.
    # bf16 MXU operands, f32 accumulation; weights were pre-transposed in the
    # wrapper so there is no in-kernel transpose.
    attn = jnp.dot(x_ref[...], wf_ref[...],
                   preferred_element_type=jnp.float32) + bf_ref[...]      # (tm, H) f32

    # Cluster scores in f32 (tiny N=K matmul); centroids pre-scaled by
    # 1/sqrt(H) and pre-transposed in the wrapper -> no VALU scale, no vxpose.
    scores = jnp.dot(attn, cs_ref[...],
                     preferred_element_type=jnp.float32)                  # (tm, K)
    m = jnp.max(scores, axis=1, keepdims=True)
    e = jnp.exp(scores - m)
    # approx reciprocal (EUP slot): softmax rows sum to 1 only within ~1e-3;
    # fine for inference-grade cluster weights.
    cw = e * pl.reciprocal(jnp.sum(e, axis=1, keepdims=True), approx=True)

    # Cluster context + residual fuse (another tiny f32 dot).
    ctx = jnp.dot(cw, c_ref[...], preferred_element_type=jnp.float32)     # (tm, H)

    # NOTE: when B % tm != 0 the padded rows of the last block compute on
    # whatever is in the pipeline buffer; rows are independent and padded-row
    # writeback is discarded, so valid outputs are unaffected (do NOT turn
    # this into a cross-row reduction).
    fused_ref[...] = (attn + ctx).astype(fused_ref.dtype)
    cw_ref[...] = cw.astype(cw_ref.dtype)


# --------------------------------------------------------------------------
# Wrapper-side planning helpers (pure Python ints, off the hot loop)
# --------------------------------------------------------------------------
def _vmem_capacity_bytes():
    try:
        return int(pltpu.get_tpu_info().vmem_capacity_bytes)
    except Exception:
        return 64 * 2**20          # conservative: v7x per-TensorCore VMEM


def _round_up(x, m):
    return -(-x // m) * m


def _estimate_vmem(tm, H, K, out_itemsize):
    # Resident weights, single-buffered: W_fused^T bf16 + bias f32 + cs/c f32.
    weights = H * H * 2 + H * 4 + 2 * K * H * 4
    # x tile (bf16) and both output tiles are double-buffered by the pipeline.
    io = 2 * (tm * H * 2 + tm * H * out_itemsize + tm * K * 4)
    # In-kernel f32 intermediates (attn, ctx, scores/e) come out of scoped VMEM.
    scratch = 2 * tm * H * 4 + 2 * tm * K * 4
    return weights + io + scratch


def _pick_tm(B, H, K, out_itemsize, budget):
    # Mem-bound regime: biggest tile that fits the VMEM budget (512-1024 row
    # tiles reach ~85% of HBM roofline vs ~63% at 256 in measured Pallas data).
    cap_rows = max(8, _round_up(min(B, 1024), 8))
    tm = 8
    for cand in (1024, 512, 256, 128, 64, 32, 16, 8):
        if cand <= cap_rows and _estimate_vmem(cand, H, K, out_itemsize) <= budget:
            tm = cand
            break
    # Keep >=2 grid steps when B allows it so a dual-TC part (v7x) can shard
    # the batch axis across cores.
    if B >= 16:
        tm = min(tm, _round_up(pl.cdiv(B, 2), 8))
    if B < 8:
        tm = B            # block == full array dim (satisfies (8,128) rule)
    return tm


# --------------------------------------------------------------------------
# Pallas path
# --------------------------------------------------------------------------
def _clustering_attention_pallas(x, w_v, b_v, w_o, b_o, centroids, *,
                                 tm=None, fused_dtype=None):
    B, H = x.shape
    K = centroids.shape[0]
    out_dtype = x.dtype if fused_dtype is None else fused_dtype
    out_itemsize = jnp.dtype(out_dtype).itemsize
    inv_sqrt_h = 1.0 / math.sqrt(H)

    # --- algebraic folds / layout plumbing (wrapper side) ---
    w_fused = w_o @ w_v                                    # (H, H)
    b_fused = w_o @ b_v + b_o                              # (H,)

    x_bf = x.astype(jnp.bfloat16)                          # bf16 MXU LHS
    wf_t = w_fused.T.astype(jnp.bfloat16)                  # (H, H): kernel does x @ wf_t
    bf2 = b_fused.reshape(1, H).astype(jnp.float32)        # f32 bias (post-acc)
    cs = (centroids * inv_sqrt_h).T.astype(jnp.float32)    # (H, K) f32: scores operand
    c = centroids.astype(jnp.float32)                      # (K, H) f32: context operand

    # --- VMEM budget & batch tiling ---
    cap = _vmem_capacity_bytes()
    if tm is None:
        tm = _pick_tm(B, H, K, out_itemsize, int(0.7 * cap))
    grid = (pl.cdiv(B, tm),)

    est_vmem = _estimate_vmem(tm, H, K, out_itemsize)
    params = {"dimension_semantics": ("parallel",)}
    # v5e default scoped VMEM is 16 MiB -> raise whenever the plan exceeds
    # that, but never above ~0.8x physical capacity (v7x: 64 MiB per TC).
    if est_vmem > 16 * 2**20:
        params["vmem_limit_bytes"] = int(
            min(max(int(est_vmem * 1.5), 32 * 2**20), int(0.8 * cap)))
    compiler_params = pltpu.CompilerParams(**params)

    # Constant-index weight operands stay VMEM-resident across grid steps and
    # are never re-fetched -> single pipeline buffer (halves weight footprint).
    resident = lambda shape: pl.BlockSpec(shape, lambda i: (0, 0),
                                          pipeline_mode=pl.Buffered(1))
    tiled = lambda shape: pl.BlockSpec(shape, lambda i: (i, 0))

    cost = pl.CostEstimate(
        flops=2 * B * H * H + 4 * B * H * K + 2 * B * H,
        transcendentals=B * (K + 1),
        bytes_accessed=(B * H * 2                                  # x (bf16)
                        + H * H * 2 + H * 4 + 2 * K * H * 4        # weights
                        + B * H * out_itemsize + B * K * 4),       # outputs
    )

    return pl.pallas_call(
        _clustering_attention_kernel,
        out_shape=(
            jax.ShapeDtypeStruct((B, H), out_dtype),
            jax.ShapeDtypeStruct((B, K), jnp.float32),
        ),
        grid=grid,
        in_specs=[
            tiled((tm, H)),      # x (double-buffered stream)
            resident((H, H)),    # W_fused^T
            resident((1, H)),    # b_fused
            resident((H, K)),    # centroids^T * 1/sqrt(H)
            resident((K, H)),    # centroids
        ],
        out_specs=(tiled((tm, H)), tiled((tm, K))),
        compiler_params=compiler_params,
        cost_estimate=cost,
    )(x_bf, wf_t, bf2, cs, c)


# --------------------------------------------------------------------------
# Public entry point + pure-JAX reference
# --------------------------------------------------------------------------
def _clustering_attention_ref(x, w_v, b_v, w_o, b_o, centroids):
    """Pure-JAX f32 reference mirroring the PyTorch forward (eval mode)."""
    H = x.shape[1]
    attn = (x @ w_v.T + b_v) @ w_o.T + b_o
    scores = (attn @ centroids.T) / math.sqrt(H)
    cw = jax.nn.softmax(scores, axis=1)
    return attn + cw @ centroids, cw


def clustering_attention(x, w_v, b_v, w_o, b_o, centroids, *, tm=None,
                         fused_dtype=None, use_pallas=None):
    """x: (B, H). Returns (fused (B, H), cluster_weights (B, K) f32)."""
    B, H = x.shape
    if use_pallas is None:
        # Tiny problems are a few KiB: pallas_call launch/grid/DMA fixed cost
        # dominates, plain XLA fusion wins.
        use_pallas = B * H >= (1 << 17)
    if not use_pallas:
        fused, cw = _clustering_attention_ref(x, w_v, b_v, w_o, b_o, centroids)
        return fused.astype(x.dtype if fused_dtype is None else fused_dtype), cw
    return _clustering_attention_pallas(x, w_v, b_v, w_o, b_o, centroids,
                                        tm=tm, fused_dtype=fused_dtype)


# --------------------------------------------------------------------------
# Demo / self-test
# --------------------------------------------------------------------------
if __name__ == "__main__":
    batch = 8
    hidden_size = 32
    num_clusters = 8
    num_heads = 4  # noqa: F841  (folded away: seq_len==1 makes heads a no-op)

    key = jax.random.PRNGKey(0)
    kx, kin, kb, kwo, kbo, kc = jax.random.split(key, 6)

    # Deterministic synthetic parameters (same shapes as the PyTorch module).
    x = jax.random.normal(kx, (batch, hidden_size), jnp.float32)
    in_proj_weight = jax.random.normal(
        kin, (3 * hidden_size, hidden_size), jnp.float32) * 0.1
    in_proj_bias = jax.random.normal(kb, (3 * hidden_size,), jnp.float32) * 0.1
    out_proj_weight = jax.random.normal(
        kwo, (hidden_size, hidden_size), jnp.float32) * 0.1
    out_proj_bias = jax.random.normal(kbo, (hidden_size,), jnp.float32) * 0.1
    centroids = jax.random.normal(kc, (num_clusters, hidden_size), jnp.float32)

    # V slice of the packed in_proj (Q/K slices are a mathematical no-op here).
    w_v = in_proj_weight[2 * hidden_size:]
    b_v = in_proj_bias[2 * hidden_size:]

    # Force the Pallas path at these tiny demo shapes so the kernel is what
    # actually runs (the auto-dispatch would choose the XLA fallback).
    run = jax.jit(functools.partial(clustering_attention, use_pallas=True))
    fused, cw = run(x, w_v, b_v, out_proj_weight, out_proj_bias, centroids)
    jax.block_until_ready((fused, cw))

    fused_ref, cw_ref = _clustering_attention_ref(
        x, w_v, b_v, out_proj_weight, out_proj_bias, centroids)

    assert fused.shape == (batch, hidden_size)
    assert cw.shape == (batch, num_clusters)
    # bf16 MXU operands for the big projection + approx reciprocal -> loosened
    # tolerances vs the f32 reference (scores/ctx dots themselves are f32).
    assert jnp.allclose(fused, fused_ref, atol=2e-2, rtol=2e-2)
    assert jnp.allclose(cw, cw_ref, atol=1e-2, rtol=1e-2)
    assert jnp.allclose(jnp.sum(cw, axis=1), 1.0, atol=5e-3)

    print("KERNEL_OK")
</pallas_src>

<mosaic_0001>
module attributes {stable_mosaic.version = 11 : i64} {
  func.func @_clustering_attention_kernel(%arg0: i32, %arg1: memref<8x32xbf16, #tpu.memory_space<vmem>>, %arg2: memref<32x32xbf16, #tpu.memory_space<vmem>>, %arg3: memref<1x32xf32, #tpu.memory_space<vmem>>, %arg4: memref<32x8xf32, #tpu.memory_space<vmem>>, %arg5: memref<8x32xf32, #tpu.memory_space<vmem>>, %arg6: memref<8x32xf32, #tpu.memory_space<vmem>>, %arg7: memref<8x8xf32, #tpu.memory_space<vmem>>) attributes {dimension_semantics = [#tpu.dimension_semantics<parallel>], iteration_bounds = array<i64: 1>, scalar_prefetch = 0 : i64, scratch_operands = 0 : i64, tpu.core_type = #tpu.core_type<tc>, window_params = [{transform_indices = @transform_0, window_bounds = array<i64: 8, 32>}, {pipeline_mode = #tpu.pipeline_mode<synchronous>, transform_indices = @transform_1, window_bounds = array<i64: 32, 32>}, {pipeline_mode = #tpu.pipeline_mode<synchronous>, transform_indices = @transform_2, window_bounds = array<i64: 1, 32>}, {pipeline_mode = #tpu.pipeline_mode<synchronous>, transform_indices = @transform_3, window_bounds = array<i64: 32, 8>}, {pipeline_mode = #tpu.pipeline_mode<synchronous>, transform_indices = @transform_4, window_bounds = array<i64: 8, 32>}, {transform_indices = @transform_5, window_bounds = array<i64: 8, 32>}, {transform_indices = @transform_6, window_bounds = array<i64: 8, 8>}]} {
    %c0 = arith.constant 0 : index
    %c0_0 = arith.constant 0 : index
    %0 = vector.load %arg1[%c0, %c0_0] : memref<8x32xbf16, #tpu.memory_space<vmem>>, vector<8x32xbf16>
    %c0_1 = arith.constant 0 : index
    %c0_2 = arith.constant 0 : index
    %1 = vector.load %arg2[%c0_1, %c0_2] : memref<32x32xbf16, #tpu.memory_space<vmem>>, vector<32x32xbf16>
    %cst = arith.constant dense<0.000000e+00> : vector<8x32xf32>
    %2 = tpu.matmul %0, %1, %cst {dimension_numbers = #tpu.dot_dimension_numbers<[1], [0], [0], [1], [0, 0, 1, 1], [], []>} : vector<8x32xbf16>, vector<32x32xbf16>, vector<8x32xf32> -> vector<8x32xf32>
    %c0_3 = arith.constant 0 : index
    %c0_4 = arith.constant 0 : index
    %3 = vector.load %arg3[%c0_3, %c0_4] : memref<1x32xf32, #tpu.memory_space<vmem>>, vector<1x32xf32>
    %4 = vector.broadcast %3 : vector<1x32xf32> to vector<8x32xf32>
    %5 = arith.addf %2, %4 : vector<8x32xf32>
    %c0_5 = arith.constant 0 : index
    %c0_6 = arith.constant 0 : index
    %6 = vector.load %arg4[%c0_5, %c0_6] : memref<32x8xf32, #tpu.memory_space<vmem>>, vector<32x8xf32>
    %cst_7 = arith.constant dense<0.000000e+00> : vector<8x8xf32>
    %7 = tpu.matmul %5, %6, %cst_7 {dimension_numbers = #tpu.dot_dimension_numbers<[1], [0], [0], [1], [0, 0, 1, 1], [], []>} : vector<8x32xf32>, vector<32x8xf32>, vector<8x8xf32> -> vector<8x8xf32>
    %cst_8 = arith.constant dense<0xFF800000> : vector<8xf32>
    %8 = vector.multi_reduction <maximumf>, %7, %cst_8 [1] : vector<8x8xf32> to vector<8xf32>
    %9 = vector.shape_cast %8 : vector<8xf32> to vector<8x1xf32>
    %10 = vector.broadcast %9 : vector<8x1xf32> to vector<8x8xf32>
    %11 = arith.subf %7, %10 : vector<8x8xf32>
    %12 = math.exp %11 : vector<8x8xf32>
    %cst_9 = arith.constant dense<0.000000e+00> : vector<8xf32>
    %13 = vector.multi_reduction <add>, %12, %cst_9 [1] : vector<8x8xf32> to vector<8xf32>
    %14 = vector.shape_cast %13 : vector<8xf32> to vector<8x1xf32>
    %15 = tpu.reciprocal %14 {approx = true} : vector<8x1xf32> -> vector<8x1xf32>
    %16 = vector.broadcast %15 : vector<8x1xf32> to vector<8x8xf32>
    %17 = arith.mulf %12, %16 : vector<8x8xf32>
    %c0_10 = arith.constant 0 : index
    %c0_11 = arith.constant 0 : index
    %18 = vector.load %arg5[%c0_10, %c0_11] : memref<8x32xf32, #tpu.memory_space<vmem>>, vector<8x32xf32>
    %cst_12 = arith.constant dense<0.000000e+00> : vector<8x32xf32>
    %19 = tpu.matmul %17, %18, %cst_12 {dimension_numbers = #tpu.dot_dimension_numbers<[1], [0], [0], [1], [0, 0, 1, 1], [], []>} : vector<8x8xf32>, vector<8x32xf32>, vector<8x32xf32> -> vector<8x32xf32>
    %20 = arith.addf %5, %19 : vector<8x32xf32>
    %c0_13 = arith.constant 0 : index
    %c0_14 = arith.constant 0 : index
    %21 = vector.load %arg6[%c0_13, %c0_14] : memref<8x32xf32, #tpu.memory_space<vmem>>, vector<8x32xf32>
    tpu.vector_store %arg6[%c0_13, %c0_14], %20 {strides = array<i32>} : memref<8x32xf32, #tpu.memory_space<vmem>>, vector<8x32xf32>,
    %c0_15 = arith.constant 0 : index
    %c0_16 = arith.constant 0 : index
    %22 = vector.load %arg7[%c0_15, %c0_16] : memref<8x8xf32, #tpu.memory_space<vmem>>, vector<8x8xf32>
    tpu.vector_store %arg7[%c0_15, %c0_16], %17 {strides = array<i32>} : memref<8x8xf32, #tpu.memory_space<vmem>>, vector<8x8xf32>,
    return
  }
  func.func @transform_0(%arg0: i32) -> (i32, i32) {
    %c0_i32 = arith.constant 0 : i32
    %c0_i32_0 = arith.constant 0 : i32
    return %arg0, %c0_i32 : i32, i32
  }
  func.func @transform_1(%arg0: i32) -> (i32, i32) {
    %c0_i32 = arith.constant 0 : i32
    %c0_i32_0 = arith.constant 0 : i32
    %c0_i32_1 = arith.constant 0 : i32
    return %c0_i32, %c0_i32_0 : i32, i32
  }
  func.func @transform_2(%arg0: i32) -> (i32, i32) {
    %c0_i32 = arith.constant 0 : i32
    %c0_i32_0 = arith.constant 0 : i32
    %c0_i32_1 = arith.constant 0 : i32
    return %c0_i32, %c0_i32_0 : i32, i32
  }
  func.func @transform_3(%arg0: i32) -> (i32, i32) {
    %c0_i32 = arith.constant 0 : i32
    %c0_i32_0 = arith.constant 0 : i32
    %c0_i32_1 = arith.constant 0 : i32
    return %c0_i32, %c0_i32_0 : i32, i32
  }
  func.func @transform_4(%arg0: i32) -> (i32, i32) {
    %c0_i32 = arith.constant 0 : i32
    %c0_i32_0 = arith.constant 0 : i32
    %c0_i32_1 = arith.constant 0 : i32
    return %c0_i32, %c0_i32_0 : i32, i32
  }
  func.func @transform_5(%arg0: i32) -> (i32, i32) {
    %c0_i32 = arith.constant 0 : i32
    %c0_i32_0 = arith.constant 0 : i32
    return %arg0, %c0_i32 : i32, i32
  }
  func.func @transform_6(%arg0: i32) -> (i32, i32) {
    %c0_i32 = arith.constant 0 : i32
    %c0_i32_0 = arith.constant 0 : i32
    return %arg0, %c0_i32 : i32, i32
  }
}

</mosaic_0001>

<bundles_post_ra>
// kernel: clustering_attention.1
= control target key start
LH: loop header
LB: loop body
LE: loop exit
PB: predicated region body
PF: predicated region fallthrough
CT: control target
= control target key end

     0   :  { %12 = vsyncpa [#allocation3], 0  ;;  %v392_v1 = vmov 0.0   ;;  %vm393_vm0 = vmmov 0   ;;  %v394_v5 = vmov 0.0|0.0   ;;  %s493_s0 = inlined_call_operand.vmem [shape: bf16[8,32], index: 0, kind: input, shape index: {}]   ;;  %s494_s1 = inlined_call_operand.vmem [shape: bf16[32,32], index: 1, kind: input, shape index: {}]   ;;  %s495_s2 = inlined_call_operand.vmem [shape: f32[1,32], index: 2, kind: input, shape index: {}]   ;;  %s496_s3 = inlined_call_operand.vmem [shape: f32[32,8], index: 3, kind: input, shape index: {}]   ;;  %s497_s4 = inlined_call_operand.vmem [shape: f32[8,32], index: 4, kind: input, shape index: {}]   ;;  %s498_s5 = inlined_call_operand.hbm [shape: f32[8,32], index: 5, kind: output, shape index: {0}]   ;;  %s499_s6 = inlined_call_operand.hbm [shape: f32[8,8], index: 6, kind: output, shape index: {1}]  }
   0x1   :  { %v338_v0 = vld [vmem:[%s494_s1] sm:$0xff]   ;;  %303 = vmatprep.subr.bf16.mxu0 %v392_v1  ;;  %v339_v2 = vld [vmem:[%s494_s1 + $0x8] sm:$0xff]   ;;  %307 = vmatprep.mubr.msk.bf16.mxu0 %vm393_vm0, %v392_v1 }
   0x2   :  { %304 = vmatpush3.bf16.msra.mxu0 %v338_v0  ;;  %v93_v3 = vld [vmem:[%s496_s3] sm:$0xff]  ;;  %v94_v4 = vld [vmem:[%s496_s3 + $0x8] sm:$0xff]  ;;  %327 = vmatprep.subr.bf16.mxu1 %v394_v5 }
   0x3   :  { %305 = vmatprep.subr.bf16.mxu0 %v392_v1  ;;  %v328_v6 = vpack.c.bf16 %v94_v4, %v93_v3 }
   0x4   :  { %13 = vsyncpa [#allocation5], 0  ;;  %319 = vmatprep.mubr.msk.f32.mxu1 %vm393_vm0, %v392_v1  ;;  %v25_v7 = vld [vmem:[%s493_s0] sm:$0xf]  ;;  %vm49_vm1 = vcmask 261120   ;;  %v95_v8 = vld [vmem:[%s496_s3 + $0x10] sm:$0xff] }
   0x5   :  { %329 = vmatpush3.bf16.msra.mxu1 %v328_v6  ;;  %v96_v9 = vld [vmem:[%s496_s3 + $0x18] sm:$0xff]  ;;  %v287_v11 = vld [vmem:[%s495_s2] ss:$0 sm:$0xff]  ;;  %vm170_vm2 = vcmask 64512   ;;  %s395_s3 = smov [#allocation4]  }
   0x6   :  { %306 = vmatpush3.bf16.msra.mxu0 %v339_v2  ;;  %330 = vmatprep.subr.bf16.mxu1 %v394_v5  ;;  %v331_v10 = vpack.c.bf16 %v96_v9, %v95_v8  ;;  %v182_v25 = vld [vmem:[%s497_s4] sm:$0xff]  ;;  %s275_s12 = sshll.u32 %s395_s3, 4  ;;  %s276_s12 = int_to_ptr.vmem [resolvable:$true] %s275_s12 }
   0x7   :  { %s344_s13 = scalar_lea.vmem %s276_s12, 128  ;;  %p349_p1 = scmp.lt.s32.totalorder %s276_s12, %s276_s12 }
   0x8   :  { %p345_p0 = scmp.ne.s32.totalorder %s276_s12, %s344_s13  ;;  %p350_p2 = scmp.lt.s32.totalorder %s344_s13, %s344_s13 }
   0x9   :  { %308 = vmatmul.mubr.msk.bf16.vlgmr.msra.gmra.mrb[0].mxu0 %vm49_vm1, %v25_v7  ;;  %332 = vmatpush3.bf16.msra.mxu1 %v331_v10 }
   0xa   :  { %322 = vmatprep.subr.mxu1 %v392_v1  ;;  %p351_p3 = por %p350_p2, %p349_p1 }
   0xc   :  { %p352_p4 = pnand %p351_p3, %p345_p0 }
  0xdc   :  { %v87_v12 = vpop.f32.mrb[0].mxu0 }
  0xdd   :  { %v88_v13 = vadd.f32 %v287_v11, %v87_v12  ;;  %v309_v14 = vpop.f32.mrb[1].mxu0 }
  0xde   :  { %v90_v15 = vpop.f32.mrb[2].mxu0 }
  0xdf   :  { %v310_v16 = vpop.f32.mrb[3].mxu0  ;;  %320 = vmatmul.mubr.msk.f32.vlgmr.msra.gmra.mrb[0].mxu1 %vm49_vm1, %v88_v13 }
  0xe0   :  { %324 = vmatprep.mubr.msk.f32.mxu1 %vm393_vm0, %v392_v1  ;;  %323 = vmatpush3.msra.mxu1 %v182_v25 }
 0x1b2   :  { %v166_v17 = vpop.f32.mrb[0].mxu1 }
 0x1b3   :  { %v321_v18 = vpop.f32.mrb[1].mxu1  ;;  %v171_v19 = vsel %vm170_vm2, %v166_v17, -inf }
 0x1b4   :  { %172 = vmax.xlane.f32.xlu0 %v171_v19 }
 0x241   :  { %v173_v20 = vpop.xlane.xlu0 %172 }
 0x242   :  { %v174_v21 = vsub.f32 %v166_v17, %v173_v20 }
 0x244   :  { %v175_v22 = vmul.f32 1.442695, %v174_v21 }
 0x246   :  { %340 = vpow2.f32 %v175_v22 }
 0x250   :  { %v341_v23 = vpop.eup %340 }
 0x251   :  { %v177_v24 = vsel %vm170_vm2, %v341_v23, 0.0 }
 0x252   :  { %178 = vadd.xlane.f32.xlu0 %v177_v24 }
 0x2df   :  { %v179_v26 = vpop.xlane.xlu0 %178 }
 0x2e0   :  { %342 = vrcp.f32 %v179_v26 }
 0x2ea   :  { %v343_v27 = vpop.eup %342 }
 0x2eb   :  { %v181_v28 = vmul.f32 %v343_v27, %v341_v23 }
 0x2ed   :  { %258 = vst.msk [vmem:[#allocation4] sm:$0xff] %vm170_vm2, %v181_v28  ;;  %325 = vmatmul.mubr.msk.f32.vlgmr.msra.gmra.mrb[2].mxu1 %vm170_vm2, %v181_v28 }
 0x2ee   :  { %355 = shalt.err (!%p352_p4)
}
 0x2ef   :  { %s356_s15 = scalar_lea.hbm %s499_s6, 128 }
 0x2f0   :  { %p357_p5 = scmp.ne.s32.totalorder %s499_s6, %s356_s15  ;;  %p360_p6 = scmp.lt.u32.totalorder %s356_s15, %s499_s6 }
 0x2f2   :  { %p362_p7 = pnand %p360_p6, %p357_p5 }
 0x2f4   :  { %365 = shalt.err (!%p362_p7)
}
 0x2f5   :  { %278 = dma.vmem_to_hbm [thread:$0]  %s276_s12, 128, %s499_s6, [#allocation5]  }
 0x2f6   :  { %s396_s22 = smov [#allocation2]  }
 0x2f7   :  { %s265_s23 = sshll.u32 %s396_s22, 4  ;;  %s266_s23 = int_to_ptr.vmem [resolvable:$true] %s265_s23 }
 0x2f8   :  { %s366_s24 = scalar_lea.vmem %s266_s23, 128  ;;  %p371_p9 = scmp.lt.s32.totalorder %s266_s23, %s266_s23 }
 0x2f9   :  { %p367_p8 = scmp.ne.s32.totalorder %s266_s23, %s366_s24  ;;  %p372_p10 = scmp.lt.s32.totalorder %s366_s24, %s366_s24 }
 0x2fb   :  { %p373_p11 = por %p372_p10, %p371_p9 }
 0x2fd   :  { %p374_p12 = pnand %p373_p11, %p367_p8 }
 0x3c0   :  { %v252_v29 = vpop.f32.mrb[2].mxu1 }
 0x3c1   :  { %v256_v30 = vadd.f32 %v252_v29, %v88_v13  ;;  %v326_v31 = vpop.f32.mrb[3].mxu1 }
 0x3c3   :  { %257 = vst.msk [vmem:[#allocation2] sm:$0xff] %vm49_vm1, %v256_v30 }
 0x3c4   :  { %377 = shalt.err (!%p374_p12)
}
 0x3c5   :  { %s378_s27 = scalar_lea.hbm %s498_s5, 128 }
 0x3c6   :  { %p379_p13 = scmp.ne.s32.totalorder %s498_s5, %s378_s27  ;;  %p382_p0 = scmp.lt.u32.totalorder %s378_s27, %s498_s5 }
 0x3c8   :  { %p384_p1 = pnand %p382_p0, %p379_p13 }
 0x3ca   :  { %387 = shalt.err (!%p384_p1)
}
 0x3cb   :  { %268 = dma.vmem_to_hbm [thread:$0]  %s266_s23, 128, %s498_s5, [#allocation3]  }
 0x3cc   :  { %388 = dma.done.wait [#allocation3], 128  }
 0x3cd   :  { %389 = vsyncadd [#allocation3], 4294967168 }
 0x3ce   :  { %390 = dma.done.wait [#allocation5], 128  }
 0x3cf   :  { %391 = vsyncadd [#allocation5], 4294967168 }
 0x3d0   :  { %285 = vsyncpa [#allocation3], 1 }
 0x3d1   :  { %286 = vsyncpa [#allocation5], 1 }

</bundles_post_ra>
